<compile_context>
chip_gen: v5e
topology: v5e:2x2
jax: 0.10.0
libtpu: 0.0.40
codegen_flags: <defaults>
</compile_context>

<pallas_src>
import jax
import jax.numpy as jnp
from jax.experimental import pallas as pl
from jax.experimental.pallas import tpu as pltpu


def _round_up(n, m):
    return ((n + m - 1) // m) * m


def _choose_batch_tile(batch, feat, itemsize):
    """Largest batch tile (multiple of 128 output lanes) whose (TB, C) input slab
    stays <= ~4 MiB, so double-buffering fits comfortably on v5e/v6e/v7x."""
    tb = 1024
    while tb > 128 and tb * feat * itemsize > 4 * 1024 * 1024:
        tb //= 2
    return min(tb, _round_up(batch, 128))


def _linear_kernel(x_ref, w_ref, b_ref, o_ref):
    # x_ref: (TB, C) input dtype | w_ref: (1, C) f32 | b_ref: (1,) f32 in SMEM
    # o_ref: (1, 1, TB) f32  -- lane-dense row of per-example outputs
    y = jnp.einsum(
        "oc,bc->ob",
        w_ref[...],
        x_ref[...],
        preferred_element_type=jnp.float32,
    )  # (1, TB); x promoted to f32 in-vreg, f32 accumulation (matches x.float() @ W.T)
    o_ref[...] = (y + b_ref[0])[None]  # add scalar bias, write full 128-lane rows


def encoder_forward(x, weight, bias):
    """x: [B, C] (any real dtype), weight: [1, C], bias: [1] -> [B, 1] float32."""
    B, C = x.shape
    w2d = weight.astype(jnp.float32).reshape(1, C)   # weight row, stays f32 (tiny)
    b1 = bias.astype(jnp.float32).reshape(1)         # scalar bias -> SMEM

    tb = _choose_batch_tile(B, C, jnp.dtype(x.dtype).itemsize)
    b_pad = _round_up(B, tb)
    num_tiles = b_pad // tb
    if b_pad != B:
        x = jnp.pad(x, ((0, b_pad - B), (0, 0)))      # padded rows are discarded below

    out3 = pl.pallas_call(
        _linear_kernel,
        out_shape=jax.ShapeDtypeStruct((num_tiles, 1, tb), jnp.float32),
        grid=(num_tiles,),
        in_specs=[
            pl.BlockSpec((tb, C), lambda i: (i, 0)),                 # x batch tile
            pl.BlockSpec((1, C), lambda i: (0, 0)),                  # weight row
            pl.BlockSpec(memory_space=pltpu.MemorySpace.SMEM),       # bias scalar
        ],
        out_specs=pl.BlockSpec((1, 1, tb), lambda i: (i, 0, 0)),     # lane-dense rows
        compiler_params=pltpu.CompilerParams(
            dimension_semantics=("parallel",)),                      # megacore on v7x
    )(x, w2d, b1)

    # Layout plumbing only: (num_tiles, 1, TB) -> (B, 1), dropping padded rows.
    return out3.reshape(-1)[:B].reshape(B, 1)


def init_encoder_params(key, num_classes):
    """Deterministic init matching torch.nn.Linear's default (uniform +/- 1/sqrt(in))."""
    kw, kb = jax.random.split(key)
    bound = 1.0 / jnp.sqrt(jnp.float32(num_classes))
    weight = jax.random.uniform(kw, (1, num_classes), jnp.float32, -bound, bound)
    bias = jax.random.uniform(kb, (1,), jnp.float32, -bound, bound)
    return weight, bias


if __name__ == "__main__":
    key = jax.random.PRNGKey(0)
    kx, kp = jax.random.split(key)

    batch, num_classes = 8, 32
    x = jax.random.normal(kx, (batch, num_classes), dtype=jnp.bfloat16)
    weight, bias = init_encoder_params(kp, num_classes)

    out = jax.block_until_ready(encoder_forward(x, weight, bias))
    ref = x.astype(jnp.float32) @ weight.astype(jnp.float32).T + bias
    assert out.shape == (batch, 1)
    # tolerance covers MXU default-precision differences vs the XLA reference
    assert jnp.allclose(out, ref, atol=5e-3, rtol=5e-3)

    # Multi-tile path: exercises the batch grid, padding and un-padding.
    batch2 = 2500
    x2 = jax.random.normal(kx, (batch2, num_classes), dtype=jnp.bfloat16)
    out2 = jax.block_until_ready(encoder_forward(x2, weight, bias))
    ref2 = x2.astype(jnp.float32) @ weight.astype(jnp.float32).T + bias
    assert out2.shape == (batch2, 1)
    assert jnp.allclose(out2, ref2, atol=5e-3, rtol=5e-3)

    print("KERNEL_OK")
</pallas_src>

<mosaic_0001>
module attributes {stable_mosaic.version = 11 : i64} {
  func.func @_linear_kernel(%arg0: i32, %arg1: memref<128x32xbf16, #tpu.memory_space<vmem>>, %arg2: memref<1x32xf32, #tpu.memory_space<vmem>>, %arg3: memref<1xf32, #tpu.memory_space<smem>>, %arg4: memref<1x1x128xf32, #tpu.memory_space<vmem>>) attributes {dimension_semantics = [#tpu.dimension_semantics<parallel>], iteration_bounds = array<i64: 1>, scalar_prefetch = 0 : i64, scratch_operands = 0 : i64, tpu.core_type = #tpu.core_type<tc>, window_params = [{transform_indices = @transform_0, window_bounds = array<i64: 128, 32>}, {pipeline_mode = #tpu.pipeline_mode<synchronous>, transform_indices = @transform_1, window_bounds = array<i64: 1, 32>}, {transform_indices = @transform_2, window_bounds = array<i64: 1>}, {transform_indices = @transform_3, window_bounds = array<i64: 1, 1, 128>}]} {
    %c0 = arith.constant 0 : index
    %c0_0 = arith.constant 0 : index
    %0 = vector.load %arg2[%c0, %c0_0] : memref<1x32xf32, #tpu.memory_space<vmem>>, vector<1x32xf32>
    %c0_1 = arith.constant 0 : index
    %c0_2 = arith.constant 0 : index
    %1 = vector.load %arg1[%c0_1, %c0_2] : memref<128x32xbf16, #tpu.memory_space<vmem>>, vector<128x32xbf16>
    "tpu.trace_start"() <{level = 10 : i32, message = "oc,bc->ob"}> : () -> ()
    %cst = arith.constant dense<0.000000e+00> : vector<1x128xf32>
    %2 = tpu.matmul %0, %1, %cst {dimension_numbers = #tpu.dot_dimension_numbers<[1], [1], [0], [0], [0, 0, 1, 0], [], []>} : vector<1x32xf32>, vector<128x32xbf16>, vector<1x128xf32> -> vector<1x128xf32>
    "tpu.trace_stop"() : () -> ()
    %c0_3 = arith.constant 0 : index
    %3 = memref.load %arg3[%c0_3] : memref<1xf32, #tpu.memory_space<smem>>
    %4 = vector.broadcast %3 : f32 to vector<1x128xf32>
    %5 = arith.addf %2, %4 : vector<1x128xf32>
    %6 = vector.shape_cast %5 : vector<1x128xf32> to vector<1x1x128xf32>
    %c0_4 = arith.constant 0 : index
    %c0_5 = arith.constant 0 : index
    %c0_6 = arith.constant 0 : index
    %7 = vector.load %arg4[%c0_4, %c0_5, %c0_6] : memref<1x1x128xf32, #tpu.memory_space<vmem>>, vector<1x1x128xf32>
    tpu.vector_store %arg4[%c0_4, %c0_5, %c0_6], %6 {strides = array<i32>} : memref<1x1x128xf32, #tpu.memory_space<vmem>>, vector<1x1x128xf32>,
    return
  }
  func.func @transform_0(%arg0: i32) -> (i32, i32) {
    %c0_i32 = arith.constant 0 : i32
    %c0_i32_0 = arith.constant 0 : i32
    return %arg0, %c0_i32 : i32, i32
  }
  func.func @transform_1(%arg0: i32) -> (i32, i32) {
    %c0_i32 = arith.constant 0 : i32
    %c0_i32_0 = arith.constant 0 : i32
    %c0_i32_1 = arith.constant 0 : i32
    return %c0_i32, %c0_i32_0 : i32, i32
  }
  func.func @transform_2(%arg0: i32) -> i32 {
    %c0_i32 = arith.constant 0 : i32
    %c0_i32_0 = arith.constant 0 : i32
    return %c0_i32 : i32
  }
  func.func @transform_3(%arg0: i32) -> (i32, i32, i32) {
    %c0_i32 = arith.constant 0 : i32
    %c0_i32_0 = arith.constant 0 : i32
    %c0_i32_1 = arith.constant 0 : i32
    return %arg0, %c0_i32, %c0_i32_0 : i32, i32, i32
  }
}

</mosaic_0001>

<bundles_post_ra>
// kernel: tpu_custom_call.1
= control target key start
LH: loop header
LB: loop body
LE: loop exit
PB: predicated region body
PF: predicated region fallthrough
CT: control target
= control target key end

     0   :  { %vm75_vm0 = vcmask 261120   ;;  %s263_s0 = inlined_call_operand.vmem [shape: bf16[128,32], index: 0, kind: input, shape index: {}]   ;;  %s264_s1 = inlined_call_operand.vmem [shape: f32[1,32], index: 1, kind: input, shape index: {}]   ;;  %s265_s2 = inlined_call_operand.<no memory space> [shape: f32[1], index: 2, kind: input, shape index: {}]   ;;  %s266_s3 = inlined_call_operand.hbm [shape: f32[1,1,128], index: 3, kind: output, shape index: {}]  }
   0x1   :  { %v172_v0 = vld [vmem:[%s263_s0 + $0x38] sm:$0xff] }
   0x2   :  { %9 = vsyncpa [#allocation4], 0  ;;  %v101_v1 = vsel %vm75_vm0, %v172_v0, 0  ;;  %v171_v2 = vld [vmem:[%s263_s0 + $0x30] sm:$0xff]  ;;  %v170_v4 = vld [vmem:[%s263_s0 + $0x28] sm:$0xff]  ;;  %v34_v17 = vstv %s265_s2  ;;  %s200_s5 = smov [#allocation3]  }
   0x3   :  { %103 = vmatpush.bf16.xpose.msra.mxu0 %v101_v1  ;;  %v98_v3 = vsel %vm75_vm0, %v171_v2, 0  ;;  %v95_v5 = vsel %vm75_vm0, %v170_v4, 0  ;;  %v169_v6 = vld [vmem:[%s263_s0 + $0x20] sm:$0xff]  ;;  %v168_v8 = vld [vmem:[%s263_s0 + $0x18] sm:$0xff]  ;;  %v167_v10 = vld [vmem:[%s263_s0 + $0x10] sm:$0xff]  ;;  %s121_s6 = sshll.u32 %s200_s5, 4  ;;  %s122_s6 = int_to_ptr.vmem [resolvable:$true] %s121_s6 }
   0x4   :  { %v92_v7 = vsel %vm75_vm0, %v169_v6, 0  ;;  %v89_v9 = vsel %vm75_vm0, %v168_v8, 0  ;;  %v86_v11 = vsel %vm75_vm0, %v167_v10, 0  ;;  %v166_v12 = vld [vmem:[%s263_s0 + $0x8] sm:$0xff]  ;;  %v165_v14 = vld [vmem:[%s263_s0] sm:$0xff]  ;;  %s123_s9 = sshll.u32 %s266_s3, 4  ;;  %s124_s9 = int_to_ptr.hbm [resolvable:$true] %s123_s9 }
   0x5   :  { %v83_v13 = vsel %vm75_vm0, %v166_v12, 0  ;;  %v80_v15 = vsel %vm75_vm0, %v165_v14, 0  ;;  %v16_v16 = vld [vmem:[%s264_s1] sm:$0x1] }
   0xb   :  { %104 = vmatpush.bf16.xpose.msra.mxu0 %v98_v3 }
  0x13   :  { %105 = vmatpush.bf16.xpose.msra.mxu0 %v95_v5 }
  0x1b   :  { %106 = vmatpush.bf16.xpose.msra.mxu0 %v92_v7 }
  0x23   :  { %107 = vmatpush.bf16.xpose.msra.mxu0 %v89_v9 }
  0x2b   :  { %108 = vmatpush.bf16.xpose.msra.mxu0 %v86_v11 }
  0x33   :  { %109 = vmatpush.bf16.xpose.msra.mxu0 %v83_v13 }
  0x3b   :  { %110 = vmatpush.bf16.xpose.msra.mxu0 %v80_v15 }
  0x42   :  { %164 = vmatmul.msk.f32.vlgmr.msra.gmra.mxu0 %vm75_vm0, %v16_v16 }
  0xbf   :  { %v112_v18 = vpop.f32.mrf.mxu0 }
  0xc0   :  { %v113_v19 = vadd.f32 %v112_v18, %v34_v17 }
  0xc2   :  { %115 = vst [vmem:[#allocation3] sm:$0x1] %v113_v19 }
  0xc3   :  { %126 = dma.vmem_to_hbm [thread:$0]  %s122_s6, 16, %s124_s9, [#allocation4]  }
  0xc4   :  { %198 = dma.done.wait [#allocation4], 16  }
  0xc5   :  { %199 = vsyncadd [#allocation4], 4294967280 }
  0xc6   :  { %131 = vsyncpa [#allocation4], 1 }

</bundles_post_ra>
